<compile_context>
chip_gen: v7x
topology: tpu7x:2x2x1
jax: 0.10.0
libtpu: 0.0.40
codegen_flags: <defaults>
</compile_context>

<pallas_src>
from functools import partial

import jax
import jax.numpy as jnp
from jax.experimental import pallas as pl
from jax.experimental.pallas import tpu as pltpu


def _round_up(a: int, b: int) -> int:
    return (a + b - 1) // b * b


# --------------------------------------------------------------- kernels ----
def _fc_kernel_single_k(x_ref, w_ref, b_ref, o_ref, *, alpha):
    """Whole-K contraction in one MXU pass: o = alpha * (x @ w) + bias.

    x_ref: (tm, K_pad) bf16   w_ref: (K_pad, tn) bf16
    b_ref: (1, tn) f32        o_ref: (tm, tn) f32
    """
    acc = jnp.dot(x_ref[...], w_ref[...], preferred_element_type=jnp.float32)
    if alpha != 1.0:                      # static Python float, folded at trace
        acc = acc * alpha
    o_ref[...] = (acc + b_ref[...]).astype(o_ref.dtype)


def _fc_kernel_multi_k(x_ref, w_ref, b_ref, o_ref, acc_ref, *, alpha):
    """Fallback for very large K: tiled reduction with f32 VMEM accumulator."""
    k = pl.program_id(2)

    @pl.when(k == 0)
    def _():
        acc_ref[...] = jnp.zeros_like(acc_ref)

    acc_ref[...] += jnp.dot(x_ref[...], w_ref[...],
                            preferred_element_type=jnp.float32)

    @pl.when(k == pl.num_programs(2) - 1)
    def _():
        acc = acc_ref[...]
        if alpha != 1.0:
            acc = acc * alpha
        o_ref[...] = (acc + b_ref[...]).astype(o_ref.dtype)


# ------------------------------------------------------ one-time param prep --
def homomorphic_fc_prepare(weights, bias, *, scaling_factor=1.0,
                           tn_default=512, tk_default=512, single_k_max=4096):
    """Hoisted out of the per-call path: transpose + pad + bf16-cast weights,
    pre-scale + pad bias. Cache the returned dict and reuse across calls."""
    N, K = weights.shape

    # N tile: lane-dense, 256-aligned (v6e/v7x MXU) when possible.
    N_pad128 = _round_up(N, 128)
    tn = min(tn_default, N_pad128)
    N_pad = _round_up(N, tn)

    # K tile: collapse the reduction into a single grid step when it fits VMEM.
    K_pad128 = _round_up(K, 128)
    if K_pad128 <= single_k_max:
        tk = K_pad128
    else:
        tk = tk_default
    K_pad = _round_up(K, tk)

    w_p = jnp.pad(weights.astype(jnp.float32).T,
                  ((0, K_pad - K), (0, N_pad - N))).astype(jnp.bfloat16)
    b_p = jnp.pad((bias.astype(jnp.float32) * float(scaling_factor)).reshape(1, N),
                  ((0, 0), (0, N_pad - N)))
    return dict(w=w_p, b=b_p, K=K, N=N, K_pad=K_pad, N_pad=N_pad, tn=tn, tk=tk)


# ------------------------------------------------------------- forward call --
def homomorphic_fc(x, params, noise, *, c1=1.0, scale=1.0, scaling_factor=1.0,
                   noise_threshold=0.001):
    """x: (B, K) f32, params: output of homomorphic_fc_prepare,
    noise: (B, N) deterministic surrogate for torch.randn_like."""
    B, K = x.shape
    assert K == params["K"], "x feature dim must match prepared weights"
    N, K_pad, N_pad = params["N"], params["K_pad"], params["N_pad"]
    tn, tk = params["tn"], params["tk"]
    w_p, b_p = params["w"], params["b"]

    alpha = float(c1) * float(scale) * float(scaling_factor)

    # M tile: multiple of 16 (bf16 sublane packing), cap 256 (MXU height).
    tm = min(_round_up(B, 16), 256)
    B_pad = _round_up(B, tm)
    grid_m = B_pad // tm
    grid_n = N_pad // tn

    # v7x megacore: keep >=2 iterations on a parallel grid axis when possible.
    if grid_m * grid_n == 1 and tn % 256 == 0:
        tn //= 2
        grid_n = 2

    single_k = (tk == K_pad)

    # Only x is cast/padded per call; weights & bias come pre-prepared.
    x_p = jnp.pad(x, ((0, B_pad - B), (0, K_pad - K))).astype(jnp.bfloat16)

    # VMEM budget (double-buffered inputs/outputs + optional accumulator).
    kk = K_pad if single_k else tk
    per_buf = tm * kk * 2 + kk * tn * 2 + tn * 4 + tm * tn * 4
    vmem_needed = 2 * per_buf + (0 if single_k else tm * tn * 4)
    vmem_limit = int(min(max(2 * vmem_needed, 32 * 1024 * 1024),
                         48 * 1024 * 1024))

    cost = pl.CostEstimate(
        flops=2 * B_pad * K_pad * N_pad,
        transcendentals=0,
        bytes_accessed=(x_p.size * 2 + w_p.size * 2 + b_p.size * 4
                        + B_pad * N_pad * 4),
    )

    if single_k:
        out_padded = pl.pallas_call(
            partial(_fc_kernel_single_k, alpha=alpha),
            out_shape=jax.ShapeDtypeStruct((B_pad, N_pad), jnp.float32),
            grid_spec=pltpu.PrefetchScalarGridSpec(
                num_scalar_prefetch=0,
                grid=(grid_m, grid_n),
                in_specs=[
                    pl.BlockSpec((tm, K_pad), lambda i, j: (i, 0)),   # x
                    pl.BlockSpec((K_pad, tn), lambda i, j: (0, j)),   # W^T
                    pl.BlockSpec((1, tn), lambda i, j: (0, j)),       # bias*sf
                ],
                out_specs=pl.BlockSpec((tm, tn), lambda i, j: (i, j)),
            ),
            compiler_params=pltpu.CompilerParams(
                dimension_semantics=("parallel", "parallel"),
                vmem_limit_bytes=vmem_limit),
            cost_estimate=cost,
        )(x_p, w_p, b_p)
    else:
        out_padded = pl.pallas_call(
            partial(_fc_kernel_multi_k, alpha=alpha),
            out_shape=jax.ShapeDtypeStruct((B_pad, N_pad), jnp.float32),
            grid_spec=pltpu.PrefetchScalarGridSpec(
                num_scalar_prefetch=0,
                grid=(grid_m, grid_n, K_pad // tk),
                in_specs=[
                    pl.BlockSpec((tm, tk), lambda i, j, k: (i, k)),   # x
                    pl.BlockSpec((tk, tn), lambda i, j, k: (k, j)),   # W^T
                    pl.BlockSpec((1, tn), lambda i, j, k: (0, j)),    # bias*sf
                ],
                out_specs=pl.BlockSpec((tm, tn), lambda i, j, k: (i, j)),
                scratch_shapes=[pltpu.VMEM((tm, tn), jnp.float32)],
            ),
            compiler_params=pltpu.CompilerParams(
                dimension_semantics=("parallel", "parallel", "arbitrary"),
                vmem_limit_bytes=vmem_limit),
            cost_estimate=cost,
        )(x_p, w_p, b_p)

    # Padded rows hold only the bias (zero x rows), padded cols hold zeros;
    # both are sliced away here -- keep this invariant if the epilogue changes.
    y = out_padded[:B, :N]

    # ---- HomomorphicBootstrapping (global std, unbiased like torch.std) ----
    # Two-pass centered variance (no E[x^2]-E[x]^2 cancellation).
    n = y.size
    mean = jnp.sum(y) / n
    var = jnp.sum(jnp.square(y - mean)) / max(n - 1, 1)
    std = jnp.sqrt(var)
    # TODO(synk): torch prints "Noise level is high..." on bootstrap; skipped.
    y = jax.lax.cond(std > noise_threshold,
                     lambda t: t + noise * 0.01,
                     lambda t: t,
                     y)
    return y


if __name__ == "__main__":
    key = jax.random.PRNGKey(0)
    kx, kw, kb, kn = jax.random.split(key, 4)

    # small FC-layer shapes: batch=8, in_features=256, out_features=512
    B, K, N = 8, 256, 512
    x = jax.random.normal(kx, (B, K), jnp.float32)
    weights = jax.random.normal(kw, (N, K), jnp.float32)   # (out, in) torch layout
    bias = jax.random.normal(kb, (N,), jnp.float32)
    noise = jax.random.normal(kn, (B, N), jnp.float32)     # randn_like surrogate

    params = homomorphic_fc_prepare(weights, bias, scaling_factor=1.0)
    out = homomorphic_fc(x, params, noise, c1=1.0, scale=1.0, scaling_factor=1.0)
    out = jax.block_until_ready(out)

    # pure-JAX reference with matching bf16-matmul / f32-accumulate numerics
    ref = jnp.dot(x.astype(jnp.bfloat16), weights.T.astype(jnp.bfloat16),
                  preferred_element_type=jnp.float32) + bias   # C1=scale=sf=1
    std_ref = jnp.std(ref, ddof=1)
    ref = jnp.where(std_ref > 0.001, ref + noise * 0.01, ref)

    assert out.shape == (B, N)
    assert jnp.allclose(out, ref, atol=1e-3, rtol=1e-3), (
        float(jnp.max(jnp.abs(out - ref))))
    print("KERNEL_OK")
</pallas_src>

<mosaic_0001>
module attributes {stable_mosaic.version = 11 : i64} {
  func.func @_fc_kernel_single_k(%arg0: i32, %arg1: i32, %arg2: memref<16x256xbf16, #tpu.memory_space<vmem>>, %arg3: memref<256x256xbf16, #tpu.memory_space<vmem>>, %arg4: memref<1x256xf32, #tpu.memory_space<vmem>>, %arg5: memref<16x256xf32, #tpu.memory_space<vmem>>) attributes {dimension_semantics = [#tpu.dimension_semantics<parallel>, #tpu.dimension_semantics<parallel>], iteration_bounds = array<i64: 1, 2>, scalar_prefetch = 0 : i64, scratch_operands = 0 : i64, tpu.core_type = #tpu.core_type<tc>, window_params = [{transform_indices = @transform_0, window_bounds = array<i64: 16, 256>}, {transform_indices = @transform_1, window_bounds = array<i64: 256, 256>}, {transform_indices = @transform_2, window_bounds = array<i64: 1, 256>}, {transform_indices = @transform_3, window_bounds = array<i64: 16, 256>}]} {
    %c0 = arith.constant 0 : index
    %c0_0 = arith.constant 0 : index
    %0 = vector.load %arg2[%c0, %c0_0] : memref<16x256xbf16, #tpu.memory_space<vmem>>, vector<16x256xbf16>
    %c0_1 = arith.constant 0 : index
    %c0_2 = arith.constant 0 : index
    %1 = vector.load %arg3[%c0_1, %c0_2] : memref<256x256xbf16, #tpu.memory_space<vmem>>, vector<256x256xbf16>
    %cst = arith.constant dense<0.000000e+00> : vector<16x256xf32>
    %2 = tpu.matmul %0, %1, %cst {dimension_numbers = #tpu.dot_dimension_numbers<[1], [0], [0], [1], [0, 0, 1, 1], [], []>} : vector<16x256xbf16>, vector<256x256xbf16>, vector<16x256xf32> -> vector<16x256xf32>
    %c0_3 = arith.constant 0 : index
    %c0_4 = arith.constant 0 : index
    %3 = vector.load %arg4[%c0_3, %c0_4] : memref<1x256xf32, #tpu.memory_space<vmem>>, vector<1x256xf32>
    %4 = vector.broadcast %3 : vector<1x256xf32> to vector<16x256xf32>
    %5 = arith.addf %2, %4 : vector<16x256xf32>
    %c0_5 = arith.constant 0 : index
    %c0_6 = arith.constant 0 : index
    %6 = vector.load %arg5[%c0_5, %c0_6] : memref<16x256xf32, #tpu.memory_space<vmem>>, vector<16x256xf32>
    tpu.vector_store %arg5[%c0_5, %c0_6], %5 {strides = array<i32>} : memref<16x256xf32, #tpu.memory_space<vmem>>, vector<16x256xf32>,
    return
  }
  func.func @transform_0(%arg0: i32, %arg1: i32) -> (i32, i32) {
    %c0_i32 = arith.constant 0 : i32
    %c0_i32_0 = arith.constant 0 : i32
    return %arg0, %c0_i32 : i32, i32
  }
  func.func @transform_1(%arg0: i32, %arg1: i32) -> (i32, i32) {
    %c0_i32 = arith.constant 0 : i32
    %c0_i32_0 = arith.constant 0 : i32
    return %c0_i32, %arg1 : i32, i32
  }
  func.func @transform_2(%arg0: i32, %arg1: i32) -> (i32, i32) {
    %c0_i32 = arith.constant 0 : i32
    %c0_i32_0 = arith.constant 0 : i32
    return %c0_i32, %arg1 : i32, i32
  }
  func.func @transform_3(%arg0: i32, %arg1: i32) -> (i32, i32) {
    %c0_i32 = arith.constant 0 : i32
    return %arg0, %arg1 : i32, i32
  }
}

</mosaic_0001>

<bundles_post_ra>
// kernel: tpu_custom_call.1
= control target key start
LH: loop header
LB: loop body
LE: loop exit
PB: predicated region body
PF: predicated region fallthrough
CT: control target
= control target key end

     0   :  { %8 = vsyncpa [#allocation3], 0  ;;  %s1260_s0 = inlined_call_operand.hbm [shape: bf16[16,256], index: 0, kind: input, shape index: {}]   ;;  %s1261_s1 = inlined_call_operand.hbm [shape: bf16[256,512], index: 1, kind: input, shape index: {}]   ;;  %s1262_s2 = inlined_call_operand.vmem [shape: f32[1,512], index: 2, kind: input, shape index: {}]   ;;  %s1263_s3 = inlined_call_operand.hbm [shape: f32[16,512], index: 3, kind: output, shape index: {}]  }
   0x1   :  { %9 = vsyncpa [#allocation6], 0 }
   0x2   :  { %11 = vsyncpa [#allocation6 + $0x1], 0 }
   0x3   :  { %12 = vsyncpa [#allocation4], 0 }
   0x4   :  { %14 = vsyncpa [#allocation4 + $0x1], 0  ;;  %s996_s12 = smov 0   ;;  %s998_s13 = smov 0  }
   0x5   :  { %s1000_s14 = smov 0   ;;  %s1002_s15 = smov 0  }
   0x6   :  { %s1004_s16 = smov 0   ;;  %s1006_s17 = smov 0  }
   0x7 LB: > { %s637_s18 = sadd.s32 4294967295, %s965_s17   ;;  %s638_s19 = sadd.s32 4294967294, %s965_s17   ;;  %s965_s17 = sphi %s1006_s17, %s20_s17   ;;  %s961_s16 = sphi %s1004_s16, %s1291_s16   ;;  %s957_s15 = sphi %s1002_s15, %s1290_s15   ;;  %s953_s14 = sphi %s1000_s14, %s1289_s14   ;;  %s949_s13 = sphi %s998_s13, %s1288_s13   ;;  %s945_s12 = sphi %s996_s12, %s1287_s12  }
   0x8   : > { %p72_p0 = scmp.ne.s32.totalorder %s953_s14, %s949_s13  ;;  %p73_p1 = scmp.eq.s32.totalorder %s965_s17, 0 }
   0x9   : > { %p78_p2 = scmp.ne.s32.totalorder %s949_s13, %s945_s12  ;;  %p1033_p3 = scmp.eq.s32.totalorder %s637_s18, 0 }
   0xa   : > { %p1037_p4 = por %p73_p1, %p72_p0  ;;  %p130_p5 = scmp.eq.s32.totalorder %s637_s18, 1 }
   0xb   : > { %s1271_s20 = scalar_select %p1033_p3, 1, 0 }
   0xc   : > { %p1043_p6 = por %p1033_p3, %p78_p2  ;;  %p136_p7 = scmp.eq.s32.totalorder %s638_s19, 1 }
   0xd   : > { %p1047_p8 = por %p130_p5, %p72_p0  ;;  %p639_p9 = scmp.ge.s32.totalorder %s965_s17, 1 }
   0xe   : > { %s1273_s22 = scalar_select %p1043_p6, 1, 0 }
   0xf   : > { %s1274_s23 = scalar_select %p1047_p8, 1, 0 }
  0x10   : > { %p1052_p10 = por %p136_p7, %p78_p2  ;;  %p143_p11 = scmp.lt.s32.totalorder %s965_s17, 3 }
  0x11   : > { %s967_s26 = smov [#allocation2]   ;;  %p712_p1 = scmp.lt.s32.totalorder %s965_s17, 2 }
  0x12   : > { %s1275_s24 = scalar_select %p1052_p10, 1, 0 }
  0x13   : > { %p1057_p12 = pnand %p639_p9, %p143_p11  ;;  %s159_s27 = sshll.u32 %s967_s26, 4  ;;  %s1061_s27 = int_to_ptr.vmem [resolvable:$true] %s159_s27 }
  0x14   : > { %p1075_p2 = pnand %p712_p1, %p1037_p4  ;;  %s29_s30 = sadd.s32 1, %s961_s16 }
  0x15   : > { %s1276_s25 = scalar_select %p1057_p12, 1, 0 }
  0x16   : > { %p699_p13 = pneg %p1057_p12  ;;  %s821_s6 = scalar_lea.hbm %s1260_s0, 256 }
  0x17   : > { %s1278_s29 = scalar_select %p1075_p2, 1, 0 }
  0x18   : > { %p1069_p5 = pnand %p699_p13, %p1033_p3  ;;  %p822_p7 = scmp.ne.s32.totalorder %s1260_s0, %s821_s6 }
  0x19   : > { %p828_p4 = scmp.lt.u32.totalorder %s821_s6, %s1260_s0 }
  0x1a   : > { %p823_p9 = pneg %p1069_p5 }
  0x1c   : > { %p824_p11 = pnand %p823_p9, %p822_p7 }
  0x1e   : > { %p825_p13 = pneg %p824_p11 }
  0x20   : > { %p830_p1 = pnand %p828_p4, %p825_p13 }
  0x22   : > { %833 = shalt.err (!%p830_p1)
}
  0x23   : > { %s834_s11 = scalar_lea.vmem %s1061_s27, 256  ;;  %p842_p6 = scmp.lt.s32.totalorder %s1061_s27, %s1061_s27 }
  0x24   : > { %p835_p0 = scmp.ne.s32.totalorder %s1061_s27, %s834_s11  ;;  %p843_p3 = scmp.lt.s32.totalorder %s834_s11, %s834_s11 }
  0x26   : > { %p837_p10 = pnand %p835_p0, %p823_p9  ;;  %p844_p12 = por %p843_p3, %p842_p6 }
  0x28   : > { %p838_p8 = pneg %p837_p10 }
  0x2a   : > { %p845_p2 = pnand %p844_p12, %p838_p8 }
  0x2c   : > { %848 = shalt.err (!%p845_p2)
}
  0x2d   : > { %s1270_s18 = smov 128   ;;  %s969_s19 = smov 8  }
  0x2e   : > { %702 = dma.hbm_to_vmem [thread:$0]  (!%p1069_p5), %s1260_s0, 256, %s1061_s27, [#allocation3], %s1270_s18, %s1270_s18, %s969_s19  }
  0x2f   : > { %p30_p3 = scmp.ge.s32.totalorder %s29_s30, 2  ;;  %s65_s4 = sadd.s32 1, %s953_s14 }
  0x30   : > { %s173_s5 = sand.u32 1, %s953_s14   ;;  %s689_s8 = sshll.u32 %s961_s16, 7 }
  0x31   : > { %s1293_s30 = smov (%p30_p3, %s29_s30), 0  ;;  %s642_s6 = sshll.u32 %s173_s5, 8 }
  0x32   : > { %s62_s7 = ssub.s32 %s961_s16, %s1293_s30  ;;  %s1114_s10 = scalar_lea.hbm %s1261_s1, %s689_s8 }
  0x33   : > { %p63_p6 = scmp.eq.s32.totalorder %s62_s7, 0  ;;  %s177_s27 = scalar_lea.vmem [#allocation5], %s642_s6 }
  0x34   : > { %s184_s11 = sshll.u32 %s177_s27, 4  ;;  %s1121_s26 = scalar_lea.sflag [#allocation6], %s173_s5  ;;  %s1119_s11 = int_to_ptr.vmem [resolvable:$true] %s184_s11 }
  0x35   : > { %s1117_s21 = scalar_select %p63_p6, %s953_s14, %s65_s4  }
  0x36   : > { %s849_s18 = scalar_lea.hbm %s1114_s10, 4096  ;;  %p1279_p10 = scmp.ne.s32.totalorder %s1278_s29, 0 }
  0x37   : > { %p850_p8 = scmp.ne.s32.totalorder %s1114_s10, %s849_s18  ;;  %s854_s28 = scalar_lea.hbm %s1261_s1, 8192 }
  0x38   : > { %p851_p12 = pneg %p1279_p10  ;;  %p855_p2 = scmp.lt.u32.totalorder %s1114_s10, %s1261_s1 }
  0x39   : > { %p856_p7 = scmp.lt.u32.totalorder %s854_s28, %s849_s18  ;;  %p858_p11 = scmp.lt.u32.totalorder %s849_s18, %s1114_s10 }
  0x3a   : > { %p852_p0 = pnand %p851_p12, %p850_p8 }
  0x3b   : > { %p857_p9 = por %p856_p7, %p855_p2 }
  0x3c   : > { %p853_p5 = pneg %p852_p0 }
  0x3d   : > { %p859_p13 = por %p858_p11, %p857_p9 }
  0x3f   : > { %p860_p4 = pnand %p859_p13, %p853_p5 }
  0x41   : > { %863 = shalt.err (!%p860_p4)
}
  0x42   : > { %s864_s4 = scalar_lea.vmem %s1119_s11, 4096  ;;  %s970_s5 = smov [#allocation5]  }
  0x43   : > { %p865_p1 = scmp.ne.s32.totalorder %s1119_s11, %s864_s4  ;;  %s869_s27 = sshll.u32 %s970_s5, 4  ;;  %s870_s27 = int_to_ptr.vmem [resolvable:$false] %s869_s27 }
  0x44   : > { %s871_s7 = scalar_lea.vmem %s870_s27, 8192  ;;  %p872_p8 = scmp.lt.s32.totalorder %s1119_s11, %s870_s27 }
  0x45   : > { %p867_p3 = pnand %p865_p1, %p851_p12  ;;  %p873_p0 = scmp.lt.s32.totalorder %s871_s7, %s864_s4 }
  0x47   : > { %p868_p6 = pneg %p867_p3  ;;  %p874_p2 = por %p873_p0, %p872_p8 }
  0x49   : > { %p875_p7 = pnand %p874_p2, %p868_p6 }
  0x4b   : > { %878 = shalt.err (!%p875_p7)
}
  0x4c   : > { %s971_s18 = smov 256   ;;  %s1280_s8 = smov 128  }
  0x4d   : > { %706 = dma.hbm_to_vmem [thread:$0]  (!%p1279_p10), %s1114_s10, 4096, %s1119_s11, %s1121_s26, %s971_s18, %s1280_s8, %s969_s19  }
  0x4e   : > { %p1281_p12 = scmp.ne.s32.totalorder %s1276_s25, 0 }
  0x4f   : > { %p1282_p5 = scmp.ne.s32.totalorder (!%p1281_p12), %s1271_s20, 0 }
  0x50   : > { %204 = sbr.rel (%p1281_p12) target bundleno = 390 (0x186), region = 32 }
  0x57   : > { %932 = dma.done.wait (%p1282_p5), [#allocation3], 256  }
  0x58   : > { %934 = vsyncadd (%p1282_p5), [#allocation3], 4294967040  ;;  %s1158_s28 = sand.u32 1, %s949_s13   ;;  %p1283_p10 = scmp.ne.s32.totalorder %s1273_s22, 0 }
  0x59   : > { %s647_s29 = sshll.u32 %s1158_s28, 8  ;;  %s211_s6 = scalar_lea.sflag [#allocation6], %s1158_s28 }
  0x5a   : > { %s1162_s9 = scalar_lea.vmem [#allocation5], %s647_s29 }
  0x5b   : > { %936 = dma.done.wait (%p1283_p10), %s211_s6, 4096  }
  0x5c   : > { %938 = vsyncadd (%p1283_p10), %s211_s6, 4294963200  ;;  %v770_v0 = vld [vmem:[%s1162_s9 + $0x4] ss:$8 sps:$4 sm:$0xff]   ;;  %v772_v1 = vld [vmem:[%s1162_s9] ss:$8 sps:$4 sm:$0xff]   ;;  %s649_s20 = sshll.u32 %s957_s15, 1  ;;  %v286_v34 = vlaneseq }
  0x5d   : > { %466 = vmatprep.subr.bf16.mxu0 %v770_v0  ;;  %v773_v2 = vld [vmem:[%s1162_s9 + $0x14] ss:$8 sps:$4 sm:$0xff]   ;;  %v775_v3 = vld [vmem:[%s1162_s9 + $0x10] ss:$8 sps:$4 sm:$0xff]   ;;  %v776_v4 = vld [vmem:[%s1162_s9 + $0x24] ss:$8 sps:$4 sm:$0xff]  }
  0x5e   : > { %467 = vmatpush1.bf16.msra.mxu0 %v772_v1  ;;  %v778_v5 = vld [vmem:[%s1162_s9 + $0x20] ss:$8 sps:$4 sm:$0xff]   ;;  %v779_v6 = vld [vmem:[%s1162_s9 + $0x34] ss:$8 sps:$4 sm:$0xff]   ;;  %v781_v7 = vld [vmem:[%s1162_s9 + $0x30] ss:$8 sps:$4 sm:$0xff]  }
  0x5f   : > { %468 = vmatprep.subr.bf16.mxu0 %v773_v2  ;;  %v782_v8 = vld [vmem:[%s1162_s9 + $0x44] ss:$8 sps:$4 sm:$0xff]   ;;  %v784_v9 = vld [vmem:[%s1162_s9 + $0x40] ss:$8 sps:$4 sm:$0xff]   ;;  %v785_v10 = vld [vmem:[%s1162_s9 + $0x54] ss:$8 sps:$4 sm:$0xff]  }
  0x60   : > { %v787_v11 = vld [vmem:[%s1162_s9 + $0x50] ss:$8 sps:$4 sm:$0xff]   ;;  %v788_v12 = vld [vmem:[%s1162_s9 + $0x64] ss:$8 sps:$4 sm:$0xff]   ;;  %v820_v13 = vld [vmem:[#allocation2 + $0x4] ss:$8 sps:$4 sm:$0xff]  }
  0x61   : > { %v790_v14 = vld [vmem:[%s1162_s9 + $0x60] ss:$8 sps:$4 sm:$0xff]   ;;  %v791_v15 = vld [vmem:[%s1162_s9 + $0x74] ss:$8 sps:$4 sm:$0xff]   ;;  %498 = vmatprep.mubr.bf16.mxu0 %v820_v13  ;;  %v793_v16 = vld [vmem:[%s1162_s9 + $0x70] ss:$8 sps:$4 sm:$0xff]  }
  0x62   : > { %469 = vmatpush1.bf16.msra.mxu0 %v775_v3  ;;  %v794_v17 = vld [vmem:[%s1162_s9 + $0x84] ss:$8 sps:$4 sm:$0xff]   ;;  %v796_v18 = vld [vmem:[%s1162_s9 + $0x80] ss:$8 sps:$4 sm:$0xff]   ;;  %v797_v19 = vld [vmem:[%s1162_s9 + $0x94] ss:$8 sps:$4 sm:$0xff]  }
  0x63   : > { %470 = vmatprep.subr.bf16.mxu0 %v776_v4  ;;  %v799_v20 = vld [vmem:[%s1162_s9 + $0x90] ss:$8 sps:$4 sm:$0xff]   ;;  %v800_v21 = vld [vmem:[%s1162_s9 + $0xa4] ss:$8 sps:$4 sm:$0xff]   ;;  %v802_v22 = vld [vmem:[%s1162_s9 + $0xa0] ss:$8 sps:$4 sm:$0xff]  }
  0x64   : > { %v803_v23 = vld [vmem:[%s1162_s9 + $0xb4] ss:$8 sps:$4 sm:$0xff]   ;;  %v805_v24 = vld [vmem:[%s1162_s9 + $0xb0] ss:$8 sps:$4 sm:$0xff]   ;;  %v806_v25 = vld [vmem:[%s1162_s9 + $0xc4] ss:$8 sps:$4 sm:$0xff]  }
  0x65   : > { %v808_v26 = vld [vmem:[%s1162_s9 + $0xc0] ss:$8 sps:$4 sm:$0xff]   ;;  %v809_v27 = vld [vmem:[%s1162_s9 + $0xd4] ss:$8 sps:$4 sm:$0xff]   ;;  %v811_v28 = vld [vmem:[%s1162_s9 + $0xd0] ss:$8 sps:$4 sm:$0xff]  }
  0x66   : > { %471 = vmatpush1.bf16.msra.mxu0 %v778_v5  ;;  %v812_v29 = vld [vmem:[%s1162_s9 + $0xe4] ss:$8 sps:$4 sm:$0xff]   ;;  %v814_v30 = vld [vmem:[%s1162_s9 + $0xe0] ss:$8 sps:$4 sm:$0xff]   ;;  %v815_v31 = vld [vmem:[%s1162_s9 + $0xf4] ss:$8 sps:$4 sm:$0xff]  }
  0x67   : > { %472 = vmatprep.subr.bf16.mxu0 %v779_v6  ;;  %v817_v32 = vld [vmem:[%s1162_s9 + $0xf0] ss:$8 sps:$4 sm:$0xff]   ;;  %p244_p9 = scmp.lt.s32.totalorder %s649_s20, 3  ;;  %v287_v35 = vshrl.u32 %v286_v34, 7  ;;  %s648_s10 = sshll.u32 %s1158_s28, 5 }
  0x68   : > { %v818_v33 = vld [vmem:[#allocation2] ss:$8 sps:$4 sm:$0xff]   ;;  %s240_s11 = scalar_lea.vmem [#allocation7], %s648_s10  ;;  %s690_s4 = sshll.u32 %s957_s15, 8 }
  0x69   : > { %s1295_s20 = smov (!%p244_p9, %s649_s20), 3  ;;  %v288_v36 = vsub.s32 0, %v287_v35  ;;  %v292_v38 = vsub.s32 1, %v287_v35  ;;  %s530_s26 = sshll.u32 %s240_s11, 4  ;;  %s1206_s26 = int_to_ptr.vmem [resolvable:$true] %s530_s26 }
  0x6a   : > { %473 = vmatpush1.bf16.msra.mxu0 %v781_v7  ;;  %s246_s19 = scalar_lea.vmem %s1262_s2, %s1295_s20  ;;  %s1211_s7 = scalar_lea.hbm %s1263_s3, %s690_s4 }
  0x6b   : > { %474 = vmatprep.subr.bf16.mxu0 %v782_v8  ;;  %v284_v37 = vld [vmem:[%s246_s19] sm:$0x3]  ;;  %s514_s15 = scalar_lea.sflag [#allocation4], %s1158_s28  ;;  %s879_s18 = scalar_lea.vmem %s1206_s26, 512 }
  0x6c   : > { %v289_v39 = vrot.slane %v284_v37, %v288_v36  ;;  %v293_v40 = vrot.slane %v284_v37, %v292_v38  ;;  %p880_p11 = scmp.ne.s32.totalorder %s1206_s26, %s879_s18  ;;  %p1284_p13 = scmp.ne.s32.totalorder %s1274_s23, 0 }
  0x6d   : > { %s972_s8 = smov [#allocation7]  }
  0x6e   : > { %475 = vmatpush1.bf16.msra.mxu0 %v784_v9  ;;  %p881_p4 = pnand %p880_p11, %p1284_p13  ;;  %s883_s29 = sshll.u32 %s972_s8, 4  ;;  %s884_s29 = int_to_ptr.vmem [resolvable:$false] %s883_s29 }
  0x6f   : > { %476 = vmatprep.subr.bf16.mxu0 %v785_v10  ;;  %s885_s6 = scalar_lea.vmem %s884_s29, 1024  ;;  %p886_p3 = scmp.lt.s32.totalorder %s1206_s26, %s884_s29 }
  0x70   : > { %p882_p1 = pneg %p881_p4  ;;  %p887_p6 = scmp.lt.s32.totalorder %s885_s6, %s879_s18 }
  0x72   : > { %477 = vmatpush1.bf16.msra.mxu0 %v787_v11  ;;  %p888_p8 = por %p887_p6, %p886_p3 }
  0x73   : > { %478 = vmatprep.subr.bf16.mxu0 %v788_v12 }
  0x74   : > { %p889_p0 = pnand %p888_p8, %p882_p1 }
  0x76   : > { %479 = vmatpush1.bf16.msra.mxu0 %v790_v14 }
  0x77   : > { %480 = vmatprep.subr.bf16.mxu0 %v791_v15 }
  0x7a   : > { %481 = vmatpush1.bf16.msra.mxu0 %v793_v16 }
  0x7b   : > { %482 = vmatprep.subr.bf16.mxu0 %v794_v17 }
  0x7e   : > { %483 = vmatpush1.bf16.msra.mxu0 %v796_v18 }
  0x7f   : > { %484 = vmatprep.subr.bf16.mxu0 %v797_v19 }
  0x82   : > { %485 = vmatpush1.bf16.msra.mxu0 %v799_v20 }
  0x83   : > { %486 = vmatprep.subr.bf16.mxu0 %v800_v21 }
  0x86   : > { %487 = vmatpush1.bf16.msra.mxu0 %v802_v22 }
  0x87   : > { %488 = vmatprep.subr.bf16.mxu0 %v803_v23 }
  0x8a   : > { %489 = vmatpush1.bf16.msra.mxu0 %v805_v24 }
  0x8b   : > { %490 = vmatprep.subr.bf16.mxu0 %v806_v25 }
  0x8e   : > { %491 = vmatpush1.bf16.msra.mxu0 %v808_v26 }
  0x8f   : > { %492 = vmatprep.subr.bf16.mxu0 %v809_v27 }
  0x92   : > { %493 = vmatpush1.bf16.msra.mxu0 %v811_v28 }
  0x93   : > { %494 = vmatprep.subr.bf16.mxu0 %v812_v29 }
  0x96   : > { %495 = vmatpush1.bf16.msra.mxu0 %v814_v30 }
  0x97   : > { %496 = vmatprep.subr.bf16.mxu0 %v815_v31 }
  0x9a   : > { %497 = vmatpush1.bf16.msra.mxu0 %v817_v32 }
  0x9d   : > { %499 = vmatmul.mubr.bf16.vlgmr.msra.gmra.mrb[0].mxu0 %v818_v33 }
 0x170   : > { %v500_v41 = vpop.f32.mrb[0].mxu0 }
 0x171   : > { %v501_v42 = vadd.f32 %v500_v41, %v289_v39  ;;  %v502_v43 = vpop.f32.mrb[1].mxu0 }
 0x172   : > { %v503_v44 = vadd.f32 %v502_v43, %v293_v40  ;;  %v504_v45 = vpop.f32.mrb[2].mxu0 }
 0x173   : > { %509 = vst [vmem:[%s240_s11] sm:$0xff] %v501_v42  ;;  %v505_v46 = vadd.f32 %v504_v45, %v289_v39  ;;  %v506_v47 = vpop.f32.mrb[3].mxu0 }
 0x174   : > { %510 = vst [vmem:[%s240_s11 + $0x8] sm:$0xff] %v503_v44  ;;  %v507_v48 = vadd.f32 %v506_v47, %v293_v40 }
 0x175   : > { %511 = vst [vmem:[%s240_s11 + $0x10] sm:$0xff] %v505_v46 }
 0x176   : > { %512 = vst [vmem:[%s240_s11 + $0x18] sm:$0xff] %v507_v48 }
 0x177   : > { %892 = shalt.err (!%p889_p0)
}
 0x178   : > { %s893_s9 = scalar_lea.hbm %s1211_s7, 512  ;;  %s897_s25 = scalar_lea.hbm %s1263_s3, 1024 }
 0x179   : > { %p894_p2 = scmp.ne.s32.totalorder %s1211_s7, %s893_s9  ;;  %p898_p5 = scmp.lt.u32.totalorder %s1211_s7, %s1263_s3 }
 0x17a   : > { %p899_p10 = scmp.lt.u32.totalorder %s897_s25, %s893_s9  ;;  %p901_p11 = scmp.lt.u32.totalorder %s893_s9, %s1211_s7 }
 0x17b   : > { %p895_p7 = pnand %p894_p2, %p1284_p13 }
 0x17c   : > { %p900_p9 = por %p899_p10, %p898_p5 }
 0x17d   : > { %p896_p12 = pneg %p895_p7 }
 0x17e   : > { %p902_p4 = por %p901_p11, %p900_p9 }
 0x180   : > { %p903_p1 = pnand %p902_p4, %p896_p12 }
 0x182   : > { %906 = shalt.err (!%p903_p1)
}
 0x183   : > { %s973_s11 = smov 256   ;;  %s974_s4 = smov 512  }
 0x184   : > { %s975_s5 = smov 16  }
 0x185   : > { %697 = dma.vmem_to_hbm [thread:$0]  (%p1284_p13), %s1206_s26, 512, %s1211_s7, %s514_s15, %s973_s11, %s974_s4, %s975_s5  }
 0x186 PF: > { %s545_s27 = sand.u32 1, %s945_s12   ;;  %p1285_p3 = scmp.ne.s32.totalorder %s1275_s24, 0 }
 0x187   : > { %p1286_p6 = scmp.ge.s32.totalorder %s965_s17, 2  ;;  %s546_s18 = scalar_lea.sflag [#allocation4], %s545_s27 }
 0x189   : > { %p708_p8 = pnand %p1286_p6, %p1285_p3 }
 0x18b   : > { %940 = dma.done.wait (!%p708_p8), %s546_s18, 512  }
 0x18c   : > { %942 = vsyncadd (!%p708_p8), %s546_s18, 4294966784  ;;  %s20_s17 = sadd.s32 1, %s965_s17   ;;  %s1287_s12 = smov %s949_s13 }
 0x18d   : > { %p17_p0 = scmp.ge.s32.totalorder %s20_s17, 4   ;;  %s1288_s13 = smov %s953_s14 }
 0x18e   : > { %s1289_s14 = smov %s1117_s21  ;;  %s1290_s15 = smov %s961_s16 }
 0x18f   : > { %s1291_s16 = smov %s1293_s30  ;;  %19 = sbr.rel (!%p17_p0) target bundleno = 7 (0x7), region = 86 }
 0x196   :  { %551 = vsyncpa [#allocation3], 1 }
 0x197   :  { %553 = vsyncpa [#allocation3 + $0x1], 1 }
 0x198   :  { %554 = vsyncpa [#allocation6], 1 }
 0x199   :  { %556 = vsyncpa [#allocation6 + $0x1], 1 }
 0x19a   :  { %557 = vsyncpa [#allocation4], 1 }
 0x19b   :  { %559 = vsyncpa [#allocation4 + $0x1], 1 }

</bundles_post_ra>
